<compile_context>
chip_gen: v7x
topology: tpu7x:2x2x1
jax: 0.10.0
libtpu: 0.0.40
codegen_flags: <defaults>
</compile_context>

<pallas_src>
import jax
import jax.numpy as jnp
from jax.experimental import pallas as pl
from jax.experimental.pallas import tpu as pltpu  # noqa: F401  (TPU backend assumed)


def quantum_layer_kernel(theta_ref, out_ref):
    # P(measure |1>) after U3(theta, phi, lambda) on |0>  ==  sin^2(theta / 2).
    theta = theta_ref[...]                       # (1, Q) f32
    s = jnp.sin(theta * 0.5)
    p1 = s * s                                   # (1, Q)
    # Mimic "count / 1000.0": expected count over 1000 shots, quantized to
    # the 1/1000 grid the shot counter would produce.
    out_ref[...] = jnp.floor(p1 * 1000.0 + 0.5) / 1000.0
    # TODO(synk): qiskit shot-sampling noise and the counts-dict key ordering
    # used to index output rows are non-deterministic and have no Pallas
    # equivalent; the deterministic per-qubit expectation is computed instead.


def quantum_layer(x, theta, phi, lambda_):
    """JAX/Pallas equivalent of QuantumLayer.forward.

    x contributes only its batch dimension (as in the PyTorch forward), so it
    is never sent to the kernel.  phi / lambda_ are accepted (they are
    nn.Parameters of the module) but do not affect measurement probabilities.
    """
    del phi, lambda_
    B = x.shape[0]
    Q = theta.shape[0]
    theta2d = jnp.asarray(theta, jnp.float32).reshape(1, Q)

    row = pl.pallas_call(
        quantum_layer_kernel,
        out_shape=jax.ShapeDtypeStruct((1, Q), jnp.float32),
        grid_spec=pl.GridSpec(
            grid=(1,),
            in_specs=[pl.BlockSpec((1, Q), lambda i: (0, 0))],   # full-array block
            out_specs=pl.BlockSpec((1, Q), lambda i: (0, 0)),    # full-array block
        ),
    )(theta2d)

    # Batch broadcast happens outside the kernel; XLA fuses it into whatever
    # consumes the result, so no (B, Q) slab is materialized by the kernel.
    return jnp.broadcast_to(row, (B, Q))


if __name__ == "__main__":
    num_qubits = 8
    batch = 2
    features = 16

    key = jax.random.PRNGKey(0)
    k_x, k_t, k_p, k_l = jax.random.split(key, 4)

    # Deterministic stand-ins for torch.randn parameter init.
    theta = jax.random.normal(k_t, (num_qubits,), dtype=jnp.float32)
    phi = jax.random.normal(k_p, (num_qubits,), dtype=jnp.float32)
    lambda_ = jax.random.normal(k_l, (num_qubits,), dtype=jnp.float32)

    x = jax.random.normal(k_x, (batch, features), dtype=jnp.float32)

    out = quantum_layer(x, theta, phi, lambda_)
    out = jax.block_until_ready(out)

    # Sanity check against a plain-JAX reference of the same deterministic math.
    ref = jnp.broadcast_to(
        jnp.floor(jnp.sin(theta * 0.5) ** 2 * 1000.0 + 0.5) / 1000.0,
        (batch, num_qubits),
    )
    assert out.shape == (batch, num_qubits)
    assert out.dtype == jnp.float32
    assert jnp.allclose(out, ref, atol=1e-6)

    print("KERNEL_OK")
</pallas_src>

<mosaic_0001>
module attributes {stable_mosaic.version = 11 : i64} {
  func.func @quantum_layer_kernel(%arg0: i32, %arg1: memref<1x8xf32, #tpu.memory_space<vmem>>, %arg2: memref<1x8xf32, #tpu.memory_space<vmem>>) attributes {dimension_semantics = [#tpu.dimension_semantics<arbitrary>], iteration_bounds = array<i64: 1>, scalar_prefetch = 0 : i64, scratch_operands = 0 : i64, tpu.core_type = #tpu.core_type<tc>, window_params = [{pipeline_mode = #tpu.pipeline_mode<synchronous>, transform_indices = @transform_0, window_bounds = array<i64: 1, 8>}, {pipeline_mode = #tpu.pipeline_mode<synchronous>, transform_indices = @transform_1, window_bounds = array<i64: 1, 8>}]} {
    %c0 = arith.constant 0 : index
    %c0_0 = arith.constant 0 : index
    %0 = vector.load %arg1[%c0, %c0_0] : memref<1x8xf32, #tpu.memory_space<vmem>>, vector<1x8xf32>
    %cst = arith.constant 5.000000e-01 : f32
    %1 = vector.broadcast %cst : f32 to vector<1x8xf32>
    %2 = arith.mulf %0, %1 : vector<1x8xf32>
    %3 = math.sin %2 : vector<1x8xf32>
    %4 = arith.mulf %3, %3 : vector<1x8xf32>
    %cst_1 = arith.constant 1.000000e+03 : f32
    %5 = vector.broadcast %cst_1 : f32 to vector<1x8xf32>
    %6 = arith.mulf %4, %5 : vector<1x8xf32>
    %cst_2 = arith.constant 5.000000e-01 : f32
    %7 = vector.broadcast %cst_2 : f32 to vector<1x8xf32>
    %8 = arith.addf %6, %7 : vector<1x8xf32>
    %9 = math.floor %8 : vector<1x8xf32>
    %cst_3 = arith.constant 1.000000e+03 : f32
    %10 = vector.broadcast %cst_3 : f32 to vector<1x8xf32>
    %11 = arith.divf %9, %10 : vector<1x8xf32>
    %c0_4 = arith.constant 0 : index
    %c0_5 = arith.constant 0 : index
    %12 = vector.load %arg2[%c0_4, %c0_5] : memref<1x8xf32, #tpu.memory_space<vmem>>, vector<1x8xf32>
    tpu.vector_store %arg2[%c0_4, %c0_5], %11 {strides = array<i32>} : memref<1x8xf32, #tpu.memory_space<vmem>>, vector<1x8xf32>,
    return
  }
  func.func @transform_0(%arg0: i32) -> (i32, i32) {
    %c0_i32 = arith.constant 0 : i32
    %c0_i32_0 = arith.constant 0 : i32
    %c0_i32_1 = arith.constant 0 : i32
    return %c0_i32, %c0_i32_0 : i32, i32
  }
  func.func @transform_1(%arg0: i32) -> (i32, i32) {
    %c0_i32 = arith.constant 0 : i32
    %c0_i32_0 = arith.constant 0 : i32
    %c0_i32_1 = arith.constant 0 : i32
    return %c0_i32, %c0_i32_0 : i32, i32
  }
}

</mosaic_0001>

<bundles_post_ra>
// kernel: tpu_custom_call.1
= control target key start
LH: loop header
LB: loop body
LE: loop exit
PB: predicated region body
PF: predicated region fallthrough
CT: control target
= control target key end

     0   :  { %6 = vsyncpa [#allocation3], 0  ;;  %s281_s0 = inlined_call_operand.hbm [shape: f32[1,8], index: 0, kind: input, shape index: {}]   ;;  %s282_s1 = inlined_call_operand.hbm [shape: f32[1,8], index: 1, kind: output, shape index: {}]  }
   0x1   :  { %7 = vsyncpa [#allocation4], 0  ;;  %s218_s6 = smov [#allocation2]   ;;  %s170_s10 = scalar_lea.hbm %s281_s0, 16 }
   0x2   :  { %s14_s7 = sshll.u32 %s218_s6, 4  ;;  %p171_p0 = scmp.ne.s32.totalorder %s281_s0, %s170_s10  ;;  %s15_s7 = int_to_ptr.vmem [resolvable:$true] %s14_s7 }
   0x3   :  { %p174_p1 = scmp.lt.u32.totalorder %s170_s10, %s281_s0 }
   0x5   :  { %p176_p2 = pnand %p174_p1, %p171_p0 }
   0x7   :  { %179 = shalt.err (!%p176_p2)
}
   0x8   :  { %s180_s15 = scalar_lea.vmem %s15_s7, 16  ;;  %s184_s16 = scalar_lea.vmem %s15_s7, 32 }
   0x9   :  { %p181_p3 = scmp.ne.s32.totalorder %s15_s7, %s180_s15  ;;  %p185_p4 = scmp.lt.s32.totalorder %s15_s7, %s15_s7 }
   0xa   :  { %p186_p5 = scmp.lt.s32.totalorder %s184_s16, %s180_s15 }
   0xc   :  { %p187_p6 = por %p186_p5, %p185_p4 }
   0xe   :  { %p188_p7 = pnand %p187_p6, %p181_p3 }
  0x10   :  { %191 = shalt.err (!%p188_p7)
}
  0x11   :  { %17 = dma.hbm_to_vmem [thread:$0]  %s281_s0, 16, %s15_s7, [#allocation3]  }
  0x12   :  { %214 = dma.done.wait [#allocation3], 16  }
  0x13   :  { %215 = vsyncadd [#allocation3], 4294967280  ;;  %v21_v0 = vld [vmem:[#allocation2] sm:$0x1]  ;;  %v219_v13 = vmov 683565275  }
  0x14   :  { %v248_v1 = vmul.f32 0.5, %v21_v0  ;;  %v220_v15 = vmov 2475754826   ;;  %v221_v17 = vmov 2131351028   ;;  %s225_s0 = smov [#allocation5]  }
  0x15   :  { %v222_v19 = vmov 2102212464   ;;  %v223_v21 = vmov 920167782   ;;  %v224_v28 = vmov 1326507024  }
  0x16   :  { %v26_v2 = vand.u32 2139095040, %v248_v1  ;;  %v23_v4 = vand.u32 2147483647, %v248_v1  ;;  %vm25_vm7 = vcmp.lt.s32.totalorder %v248_v1, 0  ;;  %vm115_vm12 = vweird.f32 %v248_v1  ;;  %s141_s19 = sshll.u32 %s225_s0, 4  ;;  %s142_s19 = int_to_ptr.vmem [resolvable:$true] %s141_s19 }
  0x17   :  { %vm133_vm13 = vcmask 57344   ;;  %s192_s20 = scalar_lea.vmem %s142_s19, 16  ;;  %s196_s21 = scalar_lea.vmem %s142_s19, 32 }
  0x18   :  { %v27_v3 = vshrl.u32 %v26_v2, 23  ;;  %v30_v7 = vand.u32 8388607, %v23_v4  ;;  %vm24_vm8 = vcmp.le.f32.partialorder %v23_v4, 0.7853982  ;;  %p193_p8 = scmp.ne.s32.totalorder %s142_s19, %s192_s20  ;;  %p197_p9 = scmp.lt.s32.totalorder %s142_s19, %s142_s19 }
  0x19   :  { %p198_p10 = scmp.lt.s32.totalorder %s196_s21, %s192_s20 }
  0x1a   :  { %v150_v5 = vadd.s32 4294967169, %v27_v3  ;;  %v31_v11 = vor.u32 8388608, %v30_v7 }
  0x1b   :  { %p199_p11 = por %p198_p10, %p197_p9 }
  0x1c   :  { %v33_v6 = vadd.s32 1, %v150_v5  ;;  %v71_v30 = vshll.u32 %v31_v11, 8 }
  0x1d   :  { %p200_p12 = pnand %p199_p11, %p193_p8 }
  0x1e   :  { %vm34_vm0 = vcmp.gt.s32.totalorder %v33_v6, 0 }
  0x1f   :  { %v35_v8 = vsel %vm34_vm0, %v33_v6, 0 }
  0x20   :  { %v37_v9 = vand.u32 31, %v35_v8  ;;  %v36_v10 = vshrl.u32 %v35_v8, 5 }
  0x22   :  { %v38_v12 = vsub.s32 32, %v37_v9  ;;  %v40_v14 = vshll.u32 %v219_v13, %v37_v9  ;;  %v43_v16 = vshll.u32 %v220_v15, %v37_v9  ;;  %v46_v18 = vshll.u32 %v221_v17, %v37_v9 }
  0x23   :  { %v49_v20 = vshll.u32 %v222_v19, %v37_v9  ;;  %v52_v22 = vshll.u32 %v223_v21, %v37_v9  ;;  %vm55_vm1 = vcmp.lt.s32.totalorder %v36_v10, 1  ;;  %vm58_vm2 = vcmp.lt.s32.totalorder %v36_v10, 4 }
  0x24   :  { %v39_v23 = vshrl.u32 %v219_v13, %v38_v12  ;;  %v41_v24 = vshrl.u32 %v220_v15, %v38_v12  ;;  %v44_v25 = vshrl.u32 %v221_v17, %v38_v12  ;;  %v47_v26 = vshrl.u32 %v222_v19, %v38_v12 }
  0x25   :  { %v50_v27 = vshrl.u32 %v223_v21, %v38_v12  ;;  %v53_v29 = vshrl.u32 %v224_v28, %v38_v12  ;;  %vm56_vm3 = vcmp.lt.s32.totalorder %v36_v10, 2  ;;  %vm57_vm4 = vcmp.lt.s32.totalorder %v36_v10, 3 }
  0x26   :  { %v42_v31 = vor.u32 %v41_v24, %v40_v14  ;;  %v45_v32 = vor.u32 %v44_v25, %v43_v16  ;;  %v48_v33 = vor.u32 %v47_v26, %v46_v18 }
  0x27   :  { %v51_v34 = vor.u32 %v50_v27, %v49_v20  ;;  %v54_v35 = vor.u32 %v53_v29, %v52_v22 }
  0x28   :  { %v59_v36 = vsel %vm55_vm1, %v39_v23, %v42_v31  ;;  %v60_v37 = vsel %vm58_vm2, %v48_v33, 2102212464  ;;  %v63_v38 = vsel %vm55_vm1, %v42_v31, %v45_v32  ;;  %v67_v39 = vsel %vm55_vm1, %v45_v32, %v48_v33 }
  0x29   :  { %v61_v40 = vsel %vm57_vm4, %v45_v32, %v60_v37  ;;  %v64_v41 = vsel %vm58_vm2, %v51_v34, 920167782  ;;  %v68_v42 = vsel %vm58_vm2, %v54_v35, 1326507024 }
  0x2a   :  { %v65_v43 = vsel %vm57_vm4, %v48_v33, %v64_v41  ;;  %v69_v44 = vsel %vm57_vm4, %v51_v34, %v68_v42  ;;  %v62_v45 = vsel %vm56_vm3, %v59_v36, %v61_v40 }
  0x2b   :  { %v66_v46 = vsel %vm56_vm3, %v63_v38, %v65_v43  ;;  %v70_v47 = vsel %vm56_vm3, %v67_v39, %v69_v44  ;;  %v78_v52 = vmul.u32 %v71_v30, %v62_v45 }
  0x2c   :  { %v254_v48 = vmul.u32.u64.low %v71_v30, %v70_v47  ;;  %v255_v49 = vmul.u32.u64.high %v71_v30, %v70_v47, %v254_v48  ;;  %v257_v50 = vmul.u32.u64.low %v71_v30, %v66_v46  ;;  %v258_v51 = vmul.u32.u64.high %v71_v30, %v66_v46, %v257_v50 }
  0x2e   :  { %vm80_vm5 = vc.u32 %v255_v49, %v257_v50  ;;  %v81_v53 = vadd.s32 1, %v258_v51  ;;  %v79_v0 = vadd.s32 %v257_v50, %v255_v49 }
  0x30   :  { %v82_v54 = vsel %vm80_vm5, %v81_v53, %v258_v51 }
  0x31   :  { %v83_v55 = vadd.s32 %v82_v54, %v78_v52 }
  0x33   :  { %v84_v56 = vadd.s32 536870912, %v83_v55 }
  0x35   :  { %v85_v57 = vshrl.u32 %v84_v56, 30 }
  0x37   :  { %v86_v58 = vshll.u32 %v85_v57, 30  ;;  %v109_v14 = vsub.s32 4, %v85_v57 }
  0x39   :  { %v87_v59 = vsub.s32 %v83_v55, %v86_v58  ;;  %v110_v17 = vsel %vm25_vm7, %v109_v14, %v85_v57 }
  0x3a   :  { %v112_v20 = vsel %vm24_vm8, 0, %v110_v17 }
  0x3b   :  { %v89_v60 = vsub.s32 0, %v87_v59  ;;  %v116_v21 = vadd.s32 3, %v112_v20 }
  0x3d   :  { %v151_v61 = vmin.u32 %v89_v60, %v87_v59  ;;  %v117_v22 = vand.u32 3, %v116_v21 }
  0x3f   :  { %v91_v62 = vclz %v151_v61  ;;  %vm122_vm9 = vcmp.eq.s32.totalorder %v117_v22, 2  ;;  %vm119_vm10 = vcmp.eq.s32.totalorder %v117_v22, 0  ;;  %vm118_vm11 = vcmp.lt.s32.totalorder %v117_v22, 2 }
  0x41   :  { %v152_v63 = vadd.s32 4294967294, %v91_v62 }
  0x43   :  { %vm153_vm6 = vcmp.lt.s32.totalorder %v152_v63, 0 }
  0x44   :  { %v94_v2 = vsel %vm153_vm6, 0, %v152_v63 }
  0x45   :  { %v95_v3 = vsub.s32 32, %v94_v2  ;;  %v96_v5 = vshll.u32 %v87_v59, %v94_v2  ;;  %v99_v6 = vsub.s32 4294967266, %v94_v2 }
  0x47   :  { %v97_v7 = vshrl.u32 %v79_v0, %v95_v3  ;;  %v100_v8 = vadd.s32 127, %v99_v6 }
  0x49   :  { %v98_v9 = vor.u32 %v97_v7, %v96_v5  ;;  %v101_v10 = vshll.u32 %v100_v8, 23 }
  0x4b   :  { %v102_v11 = vor.u32 4788187, %v101_v10  ;;  %v105_v12 = vcvt.s32.f32 %v98_v9 }
  0x4d   :  { %v103_v13 = vand.u32 2147483647, %v102_v11 }
  0x4f   :  { %v106_v15 = vmul.f32 %v105_v12, %v103_v13 }
  0x51   :  { %v107_v16 = vxor.u32 2147483648, %v106_v15 }
  0x53   :  { %v108_v18 = vsel %vm25_vm7, %v107_v16, %v106_v15 }
  0x54   :  { %v111_v19 = vsel %vm24_vm8, %v248_v1, %v108_v18 }
  0x55   :  { %166 = vcosq.f32 %v111_v19 }
  0x56   :  { %168 = vsinq.f32 %v111_v19 }
  0x5f   :  { %v167_v23 = vpop.eup %166 }
  0x60   :  { %v169_v24 = vpop.eup %168  ;;  %v123_v25 = vxor.u32 2147483648, %v167_v23 }
  0x61   :  { %v120_v26 = vxor.u32 2147483648, %v169_v24 }
  0x62   :  { %v124_v4 = vsel %vm122_vm9, %v123_v25, %v169_v24 }
  0x63   :  { %v121_v27 = vsel %vm119_vm10, %v167_v23, %v120_v26 }
  0x64   :  { %v125_v28 = vsel %vm118_vm11, %v121_v27, %v124_v4 }
  0x65   :  { %v126_v29 = vsel %vm115_vm12, nan, %v125_v28 }
  0x66   :  { %v127_v30 = vmul.f32 %v126_v29, %v126_v29 }
  0x68   :  { %v128_v31 = vmul.f32 1000.0, %v127_v30 }
  0x6a   :  { %v129_v32 = vadd.f32 0.5, %v128_v31 }
  0x6c   :  { %v130_v33 = vfloor.f32 %v129_v32 }
  0x6e   :  { %v132_v34 = vmul.f32 0.001, %v130_v33 }
  0x70   :  { %134 = vst.msk [vmem:[#allocation5] sm:$0x1] %vm133_vm13, %v132_v34 }
  0x71   :  { %203 = shalt.err (!%p200_p12)
}
  0x72   :  { %s204_s24 = scalar_lea.hbm %s282_s1, 16 }
  0x73   :  { %p205_p13 = scmp.ne.s32.totalorder %s282_s1, %s204_s24  ;;  %p208_p0 = scmp.lt.u32.totalorder %s204_s24, %s282_s1 }
  0x75   :  { %p210_p1 = pnand %p208_p0, %p205_p13 }
  0x77   :  { %213 = shalt.err (!%p210_p1)
}
  0x78   :  { %144 = dma.vmem_to_hbm [thread:$0]  %s142_s19, 16, %s282_s1, [#allocation4]  }
  0x79   :  { %216 = dma.done.wait [#allocation4], 16  }
  0x7a   :  { %217 = vsyncadd [#allocation4], 4294967280 }
  0x7b   :  { %148 = vsyncpa [#allocation3], 1 }
  0x7c   :  { %149 = vsyncpa [#allocation4], 1 }

</bundles_post_ra>
